<compile_context>
chip_gen: v5e
topology: v5e:2x2
jax: 0.10.0
libtpu: 0.0.40
codegen_flags: <defaults>
</compile_context>

<pallas_src>
import functools
import math

import jax
import jax.numpy as jnp
from jax.experimental import pallas as pl
from jax.experimental.pallas import tpu as pltpu


def _round_up(x, m):
    return ((x + m - 1) // m) * m


def _unimodal_dn_kernel(tokens_ref, we_ref, be_ref, wc_ref, bc_ref,
                        out_ref, acc_ref, *, inv_n):
    # tokens: (bt, nt, Ef)  we: (Ef, D)  be: (1, D)  wc: (D, Kp)  bc: (1, Kp)
    # out:    (bt, Kp)      acc: (bt, Ef) f32 scratch (token-sum accumulator)
    t = pl.program_id(1)

    @pl.when(t == 0)
    def _():
        acc_ref[...] = jnp.zeros_like(acc_ref)

    # Token-sum in f32 without materializing an f32 copy of the token tile.
    acc_ref[...] += jnp.sum(tokens_ref[...], axis=1, dtype=jnp.float32)

    @pl.when(t == pl.num_programs(1) - 1)
    def _():
        pooled = acc_ref[...]                       # (bt, Ef) f32
        if inv_n != 1.0:                            # trace-time constant
            pooled = pooled * inv_n
        we = we_ref[...]                            # native dtype -> MXU
        feats = jnp.dot(pooled.astype(we.dtype), we,
                        preferred_element_type=jnp.float32)      # (bt, D)
        feats = feats + be_ref[...].astype(jnp.float32)          # bias after pooling
        wc = wc_ref[...]
        logits = jnp.dot(feats.astype(wc.dtype), wc,
                         preferred_element_type=jnp.float32)     # (bt, Kp)
        logits = logits + bc_ref[...].astype(jnp.float32)
        out_ref[...] = logits.astype(out_ref.dtype)


def unimodal_dn_forward(dn, params, *, use_cls_token="mean"):
    """dn: (B, N, E) token embeddings. Returns {'unimodal_dn', 'unified'} logits."""
    w_enc, b_enc, w_cls, b_cls = params
    B, N, E = dn.shape
    D = w_enc.shape[1]
    K = w_cls.shape[1]

    # --- cls vs mean pooling (pooling commutes with the linear encoder) -----
    if use_cls_token == "cls":
        tokens = dn[:, :1, :]       # only token 0 is streamed
        n_pool = 1
    else:
        tokens = dn
        n_pool = N
    Np = tokens.shape[1]
    inv_n = 1.0 / float(n_pool)

    # --- lane-dense token layout: fold consecutive tokens into the lane axis
    # so the last dim is a multiple of 128. Pure metadata reshape (no HBM
    # copy); the fold is undone exactly by tiling w_enc along its input dim.
    fold = 1
    if E % 128 != 0 and Np > 1:
        need = 128 // math.gcd(E, 128)
        if Np % need == 0:
            fold = need
    Nf = Np // fold
    Ef = fold * E
    tokens = tokens.reshape(B, Nf, Ef)
    w_enc_eff = jnp.tile(w_enc, (fold, 1)) if fold > 1 else w_enc    # (Ef, D)

    # --- lane-dense classifier output (unmasked vector stores) --------------
    Kp = _round_up(K, 128)
    if Kp != K:
        w_cls_p = jnp.pad(w_cls, ((0, 0), (0, Kp - K)))
        b_cls_p = jnp.pad(b_cls, ((0, 0), (0, Kp - K)))
    else:
        w_cls_p, b_cls_p = w_cls, b_cls

    # --- VMEM budgets per generation (v5e/v6e: 128 MiB, v7x: 64 MiB/TC) -----
    try:
        vmem_cap = int(pltpu.get_tpu_info().vmem_capacity_bytes)
    except Exception:
        vmem_cap = 64 << 20
    vmem_limit = min((vmem_cap * 3) // 4, 96 << 20)   # scoped limit w/ headroom
    tok_budget = vmem_limit // 4                      # per token buffer (x2 pipeline bufs)

    itemsize = jnp.dtype(tokens.dtype).itemsize
    row_bytes = Ef * itemsize                         # one folded token row

    # --- batch tile: sublane-aligned; >= 2 tiles when possible (v7x megacore)
    B8 = _round_up(B, 8)
    bt = B8
    if B8 >= 16:
        bt = _round_up(pl.cdiv(B8, 2), 8)
    min_nt = Nf if Nf < 8 else 8
    bt_budget = tok_budget // max(1, min_nt * row_bytes)
    if bt_budget >= 8:
        bt = min(bt, (bt_budget // 8) * 8)
    bt = max(8, min(bt, B8))
    num_b_tiles = pl.cdiv(B8, bt)
    B_tot = num_b_tiles * bt

    # --- token chunk: bound streamed tile by budget independently of N ------
    if bt * Nf * row_bytes <= tok_budget:
        nt = Nf
    else:
        # floor of 8 keeps the second-minor dim sublane-aligned (heuristic
        # floor; only exceeds the budget in pathological tiny-budget cases).
        nt = max(8, ((tok_budget // max(1, bt * row_bytes)) // 8) * 8)
    Nf_pad = _round_up(Nf, nt)
    num_t_tiles = Nf_pad // nt

    if B_tot != B or Nf_pad != Nf:
        # Zero padding: adds 0 to the token sum; padded batch rows sliced off.
        tokens = jnp.pad(tokens, ((0, B_tot - B), (0, Nf_pad - Nf), (0, 0)))

    kernel = functools.partial(_unimodal_dn_kernel, inv_n=inv_n)

    # The kernel is HBM-bandwidth-bound on the token stream; tell XLA.
    flops = 2 * B_tot * (Ef * D + D * Kp)
    bytes_accessed = (tokens.size * itemsize
                      + w_enc_eff.size * jnp.dtype(w_enc_eff.dtype).itemsize
                      + b_enc.size * jnp.dtype(b_enc.dtype).itemsize
                      + w_cls_p.size * jnp.dtype(w_cls_p.dtype).itemsize
                      + b_cls_p.size * jnp.dtype(b_cls_p.dtype).itemsize
                      + B_tot * Kp * 4)
    cost = pl.CostEstimate(flops=int(flops), transcendentals=0,
                           bytes_accessed=int(bytes_accessed))

    def _run(single_buffer_weights):
        if single_buffer_weights:
            def wspec(shape):
                # Grid-invariant operands: fetched once, one pipeline buffer.
                return pl.BlockSpec(shape, lambda b, t: (0, 0),
                                    pipeline_mode=pl.Buffered(1))
        else:
            def wspec(shape):
                return pl.BlockSpec(shape, lambda b, t: (0, 0))

        out = pl.pallas_call(
            kernel,
            out_shape=jax.ShapeDtypeStruct((B_tot, Kp), jnp.float32),
            grid=(num_b_tiles, num_t_tiles),
            in_specs=[
                pl.BlockSpec((bt, nt, Ef), lambda b, t: (b, t, 0)),  # token stream
                wspec((Ef, D)),      # encoder weight (fold-tiled)
                wspec((1, D)),       # encoder bias
                wspec((D, Kp)),      # classifier weight (lane-padded)
                wspec((1, Kp)),      # classifier bias  (lane-padded)
            ],
            out_specs=pl.BlockSpec((bt, Kp), lambda b, t: (b, 0)),
            scratch_shapes=[pltpu.VMEM((bt, Ef), jnp.float32)],
            compiler_params=pltpu.CompilerParams(
                dimension_semantics=("parallel", "arbitrary"),
                vmem_limit_bytes=vmem_limit),
            cost_estimate=cost,
        )(tokens, w_enc_eff, b_enc, w_cls_p, b_cls_p)
        jax.block_until_ready(out)
        return out

    try:
        logits = _run(True)
    except Exception:
        # Fallback if this JAX build rejects single-buffering (Buffered(1)).
        logits = _run(False)

    logits = logits[:B, :K]
    return {"unimodal_dn": logits, "unified": logits}


def _reference_forward(dn, params, *, use_cls_token="mean"):
    w_enc, b_enc, w_cls, b_cls = params
    feats = jnp.einsum("bne,ed->bnd", dn, w_enc) + b_enc      # text encoder features
    pooled = feats[:, 0, :] if use_cls_token == "cls" else feats.mean(axis=1)
    return pooled @ w_cls + b_cls


if __name__ == "__main__":
    # Small shapes: batch=2, DN note length=8 tokens, token embedding dim=32,
    # feats_dim_dn=32, num_classes=8.
    B, N, E = 2, 8, 32
    FEATS_DIM = 32
    NUM_CLASSES = 8

    key = jax.random.PRNGKey(0)
    k_dn, k_we, k_be, k_wc, k_bc = jax.random.split(key, 5)

    dn = jax.random.normal(k_dn, (B, N, E), dtype=jnp.float32)

    # Deterministic synthetic parameters (encoder projection + classifier).
    w_enc = jax.random.normal(k_we, (E, FEATS_DIM), dtype=jnp.float32) * 0.02
    b_enc = jax.random.normal(k_be, (1, FEATS_DIM), dtype=jnp.float32) * 0.02
    w_cls = jax.random.normal(k_wc, (FEATS_DIM, NUM_CLASSES), dtype=jnp.float32) * 0.02
    b_cls = jax.random.normal(k_bc, (1, NUM_CLASSES), dtype=jnp.float32) * 0.02
    params = (w_enc, b_enc, w_cls, b_cls)

    # args.use_cls_token != 'cls' path (mean over tokens), matching the module.
    out = unimodal_dn_forward(dn, params, use_cls_token="mean")
    jax.block_until_ready(out["unified"])
    ref = _reference_forward(dn, params, use_cls_token="mean")
    assert jnp.allclose(out["unimodal_dn"], ref, atol=1e-5, rtol=1e-5)
    assert jnp.allclose(out["unified"], out["unimodal_dn"])

    # 'cls' token branch for parity with the PyTorch module.
    out_cls = unimodal_dn_forward(dn, params, use_cls_token="cls")
    jax.block_until_ready(out_cls["unified"])
    ref_cls = _reference_forward(dn, params, use_cls_token="cls")
    assert jnp.allclose(out_cls["unimodal_dn"], ref_cls, atol=1e-5, rtol=1e-5)

    print("KERNEL_OK")
</pallas_src>

<mosaic_0001>
module attributes {stable_mosaic.version = 11 : i64} {
  func.func @_unimodal_dn_kernel(%arg0: i32, %arg1: i32, %arg2: memref<8x2x128xf32, #tpu.memory_space<vmem>>, %arg3: memref<128x32xf32, #tpu.memory_space<vmem>>, %arg4: memref<1x32xf32, #tpu.memory_space<vmem>>, %arg5: memref<32x128xf32, #tpu.memory_space<vmem>>, %arg6: memref<1x128xf32, #tpu.memory_space<vmem>>, %arg7: memref<8x128xf32, #tpu.memory_space<vmem>>, %arg8: memref<8x128xf32, #tpu.memory_space<vmem>>) attributes {dimension_semantics = [#tpu.dimension_semantics<parallel>, #tpu.dimension_semantics<arbitrary>], iteration_bounds = array<i64: 1, 1>, scalar_prefetch = 0 : i64, scratch_operands = 1 : i64, tpu.core_type = #tpu.core_type<tc>, window_params = [{transform_indices = @transform_0, window_bounds = array<i64: 8, 2, 128>}, {pipeline_mode = #tpu.pipeline_mode<synchronous>, transform_indices = @transform_1, window_bounds = array<i64: 128, 32>}, {pipeline_mode = #tpu.pipeline_mode<synchronous>, transform_indices = @transform_2, window_bounds = array<i64: 1, 32>}, {pipeline_mode = #tpu.pipeline_mode<synchronous>, transform_indices = @transform_3, window_bounds = array<i64: 32, 128>}, {pipeline_mode = #tpu.pipeline_mode<synchronous>, transform_indices = @transform_4, window_bounds = array<i64: 1, 128>}, {transform_indices = @transform_5, window_bounds = array<i64: 8, 128>}]} {
    %c0_i32 = arith.constant 0 : i32
    %0 = arith.cmpi eq, %arg1, %c0_i32 : i32
    %1 = arith.extui %0 : i1 to i32
    %c0_i32_0 = arith.constant 0 : i32
    %2 = arith.cmpi ne, %1, %c0_i32_0 : i32
    scf.if %2 {
      %cst_9 = arith.constant 0.000000e+00 : f32
      %11 = vector.broadcast %cst_9 : f32 to vector<8x128xf32>
      %c0_10 = arith.constant 0 : index
      %c0_11 = arith.constant 0 : index
      %12 = vector.load %arg8[%c0_10, %c0_11] : memref<8x128xf32, #tpu.memory_space<vmem>>, vector<8x128xf32>
      tpu.vector_store %arg8[%c0_10, %c0_11], %11 {strides = array<i32>} : memref<8x128xf32, #tpu.memory_space<vmem>>, vector<8x128xf32>,
    } else {
    }
    %c0 = arith.constant 0 : index
    %c0_1 = arith.constant 0 : index
    %3 = vector.load %arg8[%c0, %c0_1] : memref<8x128xf32, #tpu.memory_space<vmem>>, vector<8x128xf32>
    %c0_2 = arith.constant 0 : index
    %c0_3 = arith.constant 0 : index
    %c0_4 = arith.constant 0 : index
    %4 = vector.load %arg2[%c0_2, %c0_3, %c0_4] : memref<8x2x128xf32, #tpu.memory_space<vmem>>, vector<8x2x128xf32>
    %cst = arith.constant dense<0.000000e+00> : vector<8x128xf32>
    %5 = vector.multi_reduction <add>, %4, %cst [1] : vector<8x2x128xf32> to vector<8x128xf32>
    %6 = arith.addf %3, %5 : vector<8x128xf32>
    %c0_5 = arith.constant 0 : index
    %c0_6 = arith.constant 0 : index
    %7 = vector.load %arg8[%c0_5, %c0_6] : memref<8x128xf32, #tpu.memory_space<vmem>>, vector<8x128xf32>
    tpu.vector_store %arg8[%c0_5, %c0_6], %6 {strides = array<i32>} : memref<8x128xf32, #tpu.memory_space<vmem>>, vector<8x128xf32>,
    %c0_i32_7 = arith.constant 0 : i32
    %8 = arith.cmpi eq, %arg1, %c0_i32_7 : i32
    %9 = arith.extui %8 : i1 to i32
    %c0_i32_8 = arith.constant 0 : i32
    %10 = arith.cmpi ne, %9, %c0_i32_8 : i32
    scf.if %10 {
      %c0_9 = arith.constant 0 : index
      %c0_10 = arith.constant 0 : index
      %11 = vector.load %arg8[%c0_9, %c0_10] : memref<8x128xf32, #tpu.memory_space<vmem>>, vector<8x128xf32>
      %cst_11 = arith.constant 1.250000e-01 : f32
      %12 = vector.broadcast %cst_11 : f32 to vector<8x128xf32>
      %13 = arith.mulf %11, %12 : vector<8x128xf32>
      %c0_12 = arith.constant 0 : index
      %c0_13 = arith.constant 0 : index
      %14 = vector.load %arg3[%c0_12, %c0_13] : memref<128x32xf32, #tpu.memory_space<vmem>>, vector<128x32xf32>
      %cst_14 = arith.constant dense<0.000000e+00> : vector<8x32xf32>
      %15 = tpu.matmul %13, %14, %cst_14 {dimension_numbers = #tpu.dot_dimension_numbers<[1], [0], [0], [1], [0, 0, 1, 1], [], []>} : vector<8x128xf32>, vector<128x32xf32>, vector<8x32xf32> -> vector<8x32xf32>
      %c0_15 = arith.constant 0 : index
      %c0_16 = arith.constant 0 : index
      %16 = vector.load %arg4[%c0_15, %c0_16] : memref<1x32xf32, #tpu.memory_space<vmem>>, vector<1x32xf32>
      %17 = vector.broadcast %16 : vector<1x32xf32> to vector<8x32xf32>
      %18 = arith.addf %15, %17 : vector<8x32xf32>
      %c0_17 = arith.constant 0 : index
      %c0_18 = arith.constant 0 : index
      %19 = vector.load %arg5[%c0_17, %c0_18] : memref<32x128xf32, #tpu.memory_space<vmem>>, vector<32x128xf32>
      %cst_19 = arith.constant dense<0.000000e+00> : vector<8x128xf32>
      %20 = tpu.matmul %18, %19, %cst_19 {dimension_numbers = #tpu.dot_dimension_numbers<[1], [0], [0], [1], [0, 0, 1, 1], [], []>} : vector<8x32xf32>, vector<32x128xf32>, vector<8x128xf32> -> vector<8x128xf32>
      %c0_20 = arith.constant 0 : index
      %c0_21 = arith.constant 0 : index
      %21 = vector.load %arg6[%c0_20, %c0_21] : memref<1x128xf32, #tpu.memory_space<vmem>>, vector<1x128xf32>
      %22 = vector.broadcast %21 : vector<1x128xf32> to vector<8x128xf32>
      %23 = arith.addf %20, %22 : vector<8x128xf32>
      %c0_22 = arith.constant 0 : index
      %c0_23 = arith.constant 0 : index
      %24 = vector.load %arg7[%c0_22, %c0_23] : memref<8x128xf32, #tpu.memory_space<vmem>>, vector<8x128xf32>
      tpu.vector_store %arg7[%c0_22, %c0_23], %23 {strides = array<i32>} : memref<8x128xf32, #tpu.memory_space<vmem>>, vector<8x128xf32>,
    } else {
    }
    return
  }
  func.func @transform_0(%arg0: i32, %arg1: i32) -> (i32, i32, i32) {
    %c0_i32 = arith.constant 0 : i32
    %c0_i32_0 = arith.constant 0 : i32
    return %arg0, %arg1, %c0_i32 : i32, i32, i32
  }
  func.func @transform_1(%arg0: i32, %arg1: i32) -> (i32, i32) {
    %c0_i32 = arith.constant 0 : i32
    %c0_i32_0 = arith.constant 0 : i32
    %c0_i32_1 = arith.constant 0 : i32
    return %c0_i32, %c0_i32_0 : i32, i32
  }
  func.func @transform_2(%arg0: i32, %arg1: i32) -> (i32, i32) {
    %c0_i32 = arith.constant 0 : i32
    %c0_i32_0 = arith.constant 0 : i32
    %c0_i32_1 = arith.constant 0 : i32
    return %c0_i32, %c0_i32_0 : i32, i32
  }
  func.func @transform_3(%arg0: i32, %arg1: i32) -> (i32, i32) {
    %c0_i32 = arith.constant 0 : i32
    %c0_i32_0 = arith.constant 0 : i32
    %c0_i32_1 = arith.constant 0 : i32
    return %c0_i32, %c0_i32_0 : i32, i32
  }
  func.func @transform_4(%arg0: i32, %arg1: i32) -> (i32, i32) {
    %c0_i32 = arith.constant 0 : i32
    %c0_i32_0 = arith.constant 0 : i32
    %c0_i32_1 = arith.constant 0 : i32
    return %c0_i32, %c0_i32_0 : i32, i32
  }
  func.func @transform_5(%arg0: i32, %arg1: i32) -> (i32, i32) {
    %c0_i32 = arith.constant 0 : i32
    %c0_i32_0 = arith.constant 0 : i32
    return %arg0, %c0_i32 : i32, i32
  }
}

module attributes {stable_mosaic.version = 11 : i64} {
  func.func @_unimodal_dn_kernel(%arg0: i32, %arg1: i32, %arg2: memref<8x2x128xf32, #tpu.memory_space<vmem>>, %arg3: memref<128x32xf32, #tpu.memory_space<vmem>>, %arg4: memref<1x32xf32, #tpu.memory_space<vmem>>, %arg5: memref<32x128xf32, #tpu.memory_space<vmem>>, %arg6: memref<1x128xf32, #tpu.memory_space<vmem>>, %arg7: memref<8x128xf32, #tpu.memory_space<vmem>>, %arg8: memref<8x128xf32, #tpu.memory_space<vmem>>) attributes {dimension_semantics = [#tpu.dimension_semantics<parallel>, #tpu.dimension_semantics<arbitrary>], iteration_bounds = array<i64: 1, 1>, scalar_prefetch = 0 : i64, scratch_operands = 1 : i64, tpu.core_type = #tpu.core_type<tc>, window_params = [{transform_indices = @transform_0, window_bounds = array<i64: 8, 2, 128>}, {pipeline_mode = #tpu.pipeline_mode<synchronous>, transform_indices = @transform_1, window_bounds = array<i64: 128, 32>}, {pipeline_mode = #tpu.pipeline_mode<synchronous>, transform_indices = @transform_2, window_bounds = array<i64: 1, 32>}, {pipeline_mode = #tpu.pipeline_mode<synchronous>, transform_indices = @transform_3, window_bounds = array<i64: 32, 128>}, {pipeline_mode = #tpu.pipeline_mode<synchronous>, transform_indices = @transform_4, window_bounds = array<i64: 1, 128>}, {transform_indices = @transform_5, window_bounds = array<i64: 8, 128>}]} {
    %c0_i32 = arith.constant 0 : i32
    %0 = arith.cmpi eq, %arg1, %c0_i32 : i32
    %1 = arith.extui %0 : i1 to i32
    %c0_i32_0 = arith.constant 0 : i32
    %2 = arith.cmpi ne, %1, %c0_i32_0 : i32
    scf.if %2 {
      %cst_9 = arith.constant 0.000000e+00 : f32
      %11 = vector.broadcast %cst_9 : f32 to vector<8x128xf32>
      %c0_10 = arith.constant 0 : index
      %c0_11 = arith.constant 0 : index
      %12 = vector.load %arg8[%c0_10, %c0_11] : memref<8x128xf32, #tpu.memory_space<vmem>>, vector<8x128xf32>
      tpu.vector_store %arg8[%c0_10, %c0_11], %11 {strides = array<i32>} : memref<8x128xf32, #tpu.memory_space<vmem>>, vector<8x128xf32>,
    } else {
    }
    %c0 = arith.constant 0 : index
    %c0_1 = arith.constant 0 : index
    %3 = vector.load %arg8[%c0, %c0_1] : memref<8x128xf32, #tpu.memory_space<vmem>>, vector<8x128xf32>
    %c0_2 = arith.constant 0 : index
    %c0_3 = arith.constant 0 : index
    %c0_4 = arith.constant 0 : index
    %4 = vector.load %arg2[%c0_2, %c0_3, %c0_4] : memref<8x2x128xf32, #tpu.memory_space<vmem>>, vector<8x2x128xf32>
    %cst = arith.constant dense<0.000000e+00> : vector<8x128xf32>
    %5 = vector.multi_reduction <add>, %4, %cst [1] : vector<8x2x128xf32> to vector<8x128xf32>
    %6 = arith.addf %3, %5 : vector<8x128xf32>
    %c0_5 = arith.constant 0 : index
    %c0_6 = arith.constant 0 : index
    %7 = vector.load %arg8[%c0_5, %c0_6] : memref<8x128xf32, #tpu.memory_space<vmem>>, vector<8x128xf32>
    tpu.vector_store %arg8[%c0_5, %c0_6], %6 {strides = array<i32>} : memref<8x128xf32, #tpu.memory_space<vmem>>, vector<8x128xf32>,
    %c0_i32_7 = arith.constant 0 : i32
    %8 = arith.cmpi eq, %arg1, %c0_i32_7 : i32
    %9 = arith.extui %8 : i1 to i32
    %c0_i32_8 = arith.constant 0 : i32
    %10 = arith.cmpi ne, %9, %c0_i32_8 : i32
    scf.if %10 {
      %c0_9 = arith.constant 0 : index
      %c0_10 = arith.constant 0 : index
      %11 = vector.load %arg8[%c0_9, %c0_10] : memref<8x128xf32, #tpu.memory_space<vmem>>, vector<8x128xf32>
      %cst_11 = arith.constant 1.250000e-01 : f32
      %12 = vector.broadcast %cst_11 : f32 to vector<8x128xf32>
      %13 = arith.mulf %11, %12 : vector<8x128xf32>
      %c0_12 = arith.constant 0 : index
      %c0_13 = arith.constant 0 : index
      %14 = vector.load %arg3[%c0_12, %c0_13] : memref<128x32xf32, #tpu.memory_space<vmem>>, vector<128x32xf32>
      %cst_14 = arith.constant dense<0.000000e+00> : vector<8x32xf32>
      %15 = tpu.matmul %13, %14, %cst_14 {dimension_numbers = #tpu.dot_dimension_numbers<[1], [0], [0], [1], [0, 0, 1, 1], [], []>} : vector<8x128xf32>, vector<128x32xf32>, vector<8x32xf32> -> vector<8x32xf32>
      %c0_15 = arith.constant 0 : index
      %c0_16 = arith.constant 0 : index
      %16 = vector.load %arg4[%c0_15, %c0_16] : memref<1x32xf32, #tpu.memory_space<vmem>>, vector<1x32xf32>
      %17 = vector.broadcast %16 : vector<1x32xf32> to vector<8x32xf32>
      %18 = arith.addf %15, %17 : vector<8x32xf32>
      %c0_17 = arith.constant 0 : index
      %c0_18 = arith.constant 0 : index
      %19 = vector.load %arg5[%c0_17, %c0_18] : memref<32x128xf32, #tpu.memory_space<vmem>>, vector<32x128xf32>
      %cst_19 = arith.constant dense<0.000000e+00> : vector<8x128xf32>
      %20 = tpu.matmul %18, %19, %cst_19 {dimension_numbers = #tpu.dot_dimension_numbers<[1], [0], [0], [1], [0, 0, 1, 1], [], []>} : vector<8x32xf32>, vector<32x128xf32>, vector<8x128xf32> -> vector<8x128xf32>
      %c0_20 = arith.constant 0 : index
      %c0_21 = arith.constant 0 : index
      %21 = vector.load %arg6[%c0_20, %c0_21] : memref<1x128xf32, #tpu.memory_space<vmem>>, vector<1x128xf32>
      %22 = vector.broadcast %21 : vector<1x128xf32> to vector<8x128xf32>
      %23 = arith.addf %20, %22 : vector<8x128xf32>
      %c0_22 = arith.constant 0 : index
      %c0_23 = arith.constant 0 : index
      %24 = vector.load %arg7[%c0_22, %c0_23] : memref<8x128xf32, #tpu.memory_space<vmem>>, vector<8x128xf32>
      tpu.vector_store %arg7[%c0_22, %c0_23], %23 {strides = array<i32>} : memref<8x128xf32, #tpu.memory_space<vmem>>, vector<8x128xf32>,
    } else {
    }
    return
  }
  func.func @transform_0(%arg0: i32, %arg1: i32) -> (i32, i32, i32) {
    %c0_i32 = arith.constant 0 : i32
    %c0_i32_0 = arith.constant 0 : i32
    return %arg0, %arg1, %c0_i32 : i32, i32, i32
  }
  func.func @transform_1(%arg0: i32, %arg1: i32) -> (i32, i32) {
    %c0_i32 = arith.constant 0 : i32
    %c0_i32_0 = arith.constant 0 : i32
    %c0_i32_1 = arith.constant 0 : i32
    return %c0_i32, %c0_i32_0 : i32, i32
  }
  func.func @transform_2(%arg0: i32, %arg1: i32) -> (i32, i32) {
    %c0_i32 = arith.constant 0 : i32
    %c0_i32_0 = arith.constant 0 : i32
    %c0_i32_1 = arith.constant 0 : i32
    return %c0_i32, %c0_i32_0 : i32, i32
  }
  func.func @transform_3(%arg0: i32, %arg1: i32) -> (i32, i32) {
    %c0_i32 = arith.constant 0 : i32
    %c0_i32_0 = arith.constant 0 : i32
    %c0_i32_1 = arith.constant 0 : i32
    return %c0_i32, %c0_i32_0 : i32, i32
  }
  func.func @transform_4(%arg0: i32, %arg1: i32) -> (i32, i32) {
    %c0_i32 = arith.constant 0 : i32
    %c0_i32_0 = arith.constant 0 : i32
    %c0_i32_1 = arith.constant 0 : i32
    return %c0_i32, %c0_i32_0 : i32, i32
  }
  func.func @transform_5(%arg0: i32, %arg1: i32) -> (i32, i32) {
    %c0_i32 = arith.constant 0 : i32
    %c0_i32_0 = arith.constant 0 : i32
    return %arg0, %c0_i32 : i32, i32
  }
}

</mosaic_0001>

<bundles_post_ra>
// kernel: tpu_custom_call.1
= control target key start
LH: loop header
LB: loop body
LE: loop exit
PB: predicated region body
PF: predicated region fallthrough
CT: control target
= control target key end

     0   :  { %vm35_vm0 = vcmask 1041408   ;;  %vm100_vm1 = vcmask 1041409   ;;  %s375_s0 = inlined_call_operand.vmem [shape: f32[8,2,128], index: 0, kind: input, shape index: {}]   ;;  %s376_s1 = inlined_call_operand.vmem [shape: f32[128,32], index: 1, kind: input, shape index: {}]   ;;  %s377_s2 = inlined_call_operand.vmem [shape: f32[1,32], index: 2, kind: input, shape index: {}]   ;;  %s378_s3 = inlined_call_operand.vmem [shape: f32[32,128], index: 3, kind: input, shape index: {}]   ;;  %s379_s4 = inlined_call_operand.vmem [shape: f32[1,128], index: 4, kind: input, shape index: {}]   ;;  %s380_s5 = inlined_call_operand.hbm [shape: f32[8,128], index: 5, kind: output, shape index: {}]  }
   0x1   :  { %v137_v0 = vld [vmem:[%s376_s1 + $0x78] sm:$0xff]  ;;  %v136_v1 = vld [vmem:[%s376_s1 + $0x70] sm:$0xff]  ;;  %v135_v2 = vld [vmem:[%s376_s1 + $0x68] sm:$0xff] }
   0x2   :  { %142 = vmatpush.msra.mxu0 %v137_v0  ;;  %v134_v3 = vld [vmem:[%s376_s1 + $0x60] sm:$0xff]  ;;  %v133_v4 = vld [vmem:[%s376_s1 + $0x58] sm:$0xff]  ;;  %v132_v7 = vld [vmem:[%s376_s1 + $0x50] sm:$0xff] }
   0x3   :  { %v27_v5 = vld [vmem:[%s375_s0] sm:$0x3]  ;;  %v28_v6 = vld [vmem:[%s375_s0 + $0x2] sm:$0x3]  ;;  %v29_v8 = vld [vmem:[%s375_s0 + $0x4] sm:$0x3] }
   0x4   :  { %143 = vmatpush.msra.mxu0 %v136_v1  ;;  %v30_v9 = vld [vmem:[%s375_s0 + $0x6] sm:$0x3]  ;;  %v31_v10 = vld [vmem:[%s375_s0 + $0x8] sm:$0x3]  ;;  %v32_v11 = vld [vmem:[%s375_s0 + $0xa] sm:$0x3] }
   0x5   :  { %v33_v12 = vld [vmem:[%s375_s0 + $0xc] sm:$0x3]  ;;  %v34_v13 = vld [vmem:[%s375_s0 + $0xe] sm:$0x3]  ;;  %v36_v14 = vsel %vm35_vm0, %v27_v5, 0.0  ;;  %v43_v15 = vsel %vm35_vm0, %v28_v6, 0.0 }
   0x6   :  { %144 = vmatpush.msra.mxu0 %v135_v2  ;;  %v50_v16 = vsel %vm35_vm0, %v29_v8, 0.0  ;;  %v57_v17 = vsel %vm35_vm0, %v30_v9, 0.0  ;;  %v165_v18 = vld [vmem:[%s378_s3 + $0x18] sm:$0xff]  ;;  %v164_v19 = vld [vmem:[%s378_s3 + $0x10] sm:$0xff]  ;;  %v37_v20 = vrot.slane %v36_v14, 4  ;;  %v44_v21 = vrot.slane %v43_v15, 4 }
   0x7   :  { %v51_v22 = vrot.slane %v50_v16, 4  ;;  %v58_v23 = vrot.slane %v57_v17, 4  ;;  %186 = vmatpush.msra.mxu1 %v165_v18  ;;  %v131_v24 = vld [vmem:[%s376_s1 + $0x48] sm:$0xff]  ;;  %v64_v25 = vsel %vm35_vm0, %v31_v10, 0.0  ;;  %v71_v26 = vsel %vm35_vm0, %v32_v11, 0.0 }
   0x8   :  { %145 = vmatpush.msra.mxu0 %v134_v3  ;;  %v78_v27 = vsel %vm35_vm0, %v33_v12, 0.0  ;;  %v85_v28 = vsel %vm35_vm0, %v34_v13, 0.0  ;;  %v38_v29 = vadd.f32 %v37_v20, %v36_v14  ;;  %v45_v30 = vadd.f32 %v44_v21, %v43_v15 }
   0x9   :  { %v52_v31 = vadd.f32 %v51_v22, %v50_v16  ;;  %v59_v32 = vadd.f32 %v58_v23, %v57_v17 }
   0xa   :  { %146 = vmatpush.msra.mxu0 %v133_v4 }
   0xc   :  { %147 = vmatpush.msra.mxu0 %v132_v7 }
   0xd   :  { %10 = vsyncpa [#allocation4], 0  ;;  %v130_v33 = vld [vmem:[%s376_s1 + $0x40] sm:$0xff]  ;;  %v65_v34 = vrot.slane %v64_v25, 4  ;;  %v72_v35 = vrot.slane %v71_v26, 4  ;;  %v79_v36 = vrot.slane %v78_v27, 4  ;;  %187 = vmatpush.msra.mxu1 %v164_v19 }
   0xe   :  { %v86_v37 = vrot.slane %v85_v28, 4  ;;  %vm102_vm2 = vcmask 1042434   ;;  %148 = vmatpush.msra.mxu0 %v131_v24  ;;  %v39_v38 = vrot.slane %v38_v29, 2  ;;  %v46_v39 = vrot.slane %v45_v30, 2  ;;  %v129_v42 = vld [vmem:[%s376_s1 + $0x38] sm:$0xff]  ;;  %v128_v51 = vld [vmem:[%s376_s1 + $0x30] sm:$0xff] }
   0xf   :  { %v53_v40 = vrot.slane %v52_v31, 2  ;;  %v60_v41 = vrot.slane %v59_v32, 2  ;;  %v66_v43 = vadd.f32 %v65_v34, %v64_v25  ;;  %v73_v44 = vadd.f32 %v72_v35, %v71_v26  ;;  %v127_v60 = vld [vmem:[%s376_s1 + $0x28] sm:$0xff]  ;;  %v126_v5 = vld [vmem:[%s376_s1 + $0x20] sm:$0xff]  ;;  %v125_v11 = vld [vmem:[%s376_s1 + $0x18] sm:$0xff]  ;;  %s241_s25 = smov [#allocation3]  }
  0x10   :  { %v80_v45 = vadd.f32 %v79_v36, %v78_v27  ;;  %v87_v46 = vadd.f32 %v86_v37, %v85_v28  ;;  %149 = vmatpush.msra.mxu0 %v130_v33  ;;  %v40_v47 = vadd.f32 %v39_v38, %v38_v29  ;;  %v47_v48 = vadd.f32 %v46_v39, %v45_v30  ;;  %v124_v16 = vld [vmem:[%s376_s1 + $0x10] sm:$0xff]  ;;  %v123_v20 = vld [vmem:[%s376_s1 + $0x8] sm:$0xff]  ;;  %v122_v23 = vld [vmem:[%s376_s1] sm:$0xff]  ;;  %s200_s26 = sshll.u32 %s241_s25, 4  ;;  %s202_s29 = sshll.u32 %s380_s5, 4  ;;  %s201_s26 = int_to_ptr.vmem [resolvable:$true] %s200_s26  ;;  %s203_s29 = int_to_ptr.hbm [resolvable:$true] %s202_s29 }
  0x11   :  { %v54_v49 = vadd.f32 %v53_v40, %v52_v31  ;;  %v61_v50 = vadd.f32 %v60_v41, %v59_v32  ;;  %v67_v52 = vrot.slane %v66_v43, 2  ;;  %v74_v53 = vrot.slane %v73_v44, 2  ;;  %v163_v26 = vld [vmem:[%s378_s3 + $0x8] sm:$0xff]  ;;  %v162_v27 = vld [vmem:[%s378_s3] sm:$0xff] }
  0x12   :  { %v81_v54 = vrot.slane %v80_v45, 2  ;;  %v88_v55 = vrot.slane %v87_v46, 2  ;;  %150 = vmatpush.msra.mxu0 %v129_v42  ;;  %v41_v56 = vrot.slane %v40_v47, 1  ;;  %v48_v57 = vrot.slane %v47_v48, 1  ;;  %188 = vmatpush.msra.mxu1 %v163_v26  ;;  %v213_v28 = vld [vmem:[%s377_s2] ss:$0 sm:$0xff] }
  0x13   :  { %v55_v58 = vrot.slane %v54_v49, 1  ;;  %v62_v59 = vrot.slane %v61_v50, 1  ;;  %v68_v61 = vadd.f32 %v67_v52, %v66_v43  ;;  %v75_v62 = vadd.f32 %v74_v53, %v73_v44  ;;  %v214_v31 = vld [vmem:[%s379_s4] ss:$0 sm:$0xff] }
  0x14   :  { %v82_v63 = vadd.f32 %v81_v54, %v80_v45  ;;  %v89_v0 = vadd.f32 %v88_v55, %v87_v46  ;;  %151 = vmatpush.msra.mxu0 %v128_v51  ;;  %v42_v1 = vadd.f32 %v41_v56, %v40_v47  ;;  %v49_v2 = vadd.f32 %v48_v57, %v47_v48 }
  0x15   :  { %v56_v3 = vadd.f32 %v55_v58, %v54_v49  ;;  %v63_v4 = vadd.f32 %v62_v59, %v61_v50  ;;  %v69_v6 = vrot.slane %v68_v61, 1  ;;  %v76_v7 = vrot.slane %v75_v62, 1  ;;  %189 = vmatpush.msra.mxu1 %v162_v27 }
  0x16   :  { %v83_v8 = vrot.slane %v82_v63, 1  ;;  %v90_v9 = vrot.slane %v89_v0, 1  ;;  %152 = vmatpush.msra.mxu0 %v127_v60  ;;  %v101_v10 = vsel %vm100_vm1, %v49_v2, %v42_v1  ;;  %vm104_vm3 = vcmask 1043459  }
  0x17   :  { %v70_v12 = vadd.f32 %v69_v6, %v68_v61  ;;  %v77_v13 = vadd.f32 %v76_v7, %v75_v62  ;;  %vm106_vm4 = vcmask 1044484   ;;  %v103_v15 = vsel %vm102_vm2, %v56_v3, %v101_v10 }
  0x18   :  { %153 = vmatpush.msra.mxu0 %v126_v5  ;;  %v84_v14 = vadd.f32 %v83_v8, %v82_v63  ;;  %vm108_vm5 = vcmask 1045509   ;;  %v91_v17 = vadd.f32 %v90_v9, %v89_v0  ;;  %v105_v18 = vsel %vm104_vm3, %v63_v4, %v103_v15 }
  0x19   :  { %vm110_vm6 = vcmask 1046534   ;;  %v107_v19 = vsel %vm106_vm4, %v70_v12, %v105_v18  ;;  %vm112_vm7 = vcmask 1047559   ;;  %vm170_vm8 = vcmask 261120  }
  0x1a   :  { %154 = vmatpush.msra.mxu0 %v125_v11  ;;  %v109_v21 = vsel %vm108_vm5, %v77_v13, %v107_v19 }
  0x1b   :  { %v111_v22 = vsel %vm110_vm6, %v84_v14, %v109_v21 }
  0x1c   :  { %155 = vmatpush.msra.mxu0 %v124_v16  ;;  %v113_v24 = vsel %vm112_vm7, %v91_v17, %v111_v22 }
  0x1d   :  { %v121_v25 = vmul.f32 0.125, %v113_v24 }
  0x1e   :  { %156 = vmatpush.msra.mxu0 %v123_v20 }
  0x20   :  { %157 = vmatpush.msra.mxu0 %v122_v23 }
  0x21   :  { %158 = vmatmul.f32.vlgmr.msra.gmra.mxu0 %v121_v25 }
  0x9e   :  { %v159_v29 = vpop.f32.mrf.mxu0 }
  0x9f   :  { %v160_v30 = vadd.f32 %v213_v28, %v159_v29 }
  0xa1   :  { %211 = vmatmul.msk.f32.vlgmr.msra.gmra.mxu1 %vm170_vm8, %v160_v30 }
 0x11e   :  { %v191_v32 = vpop.f32.mrf.mxu1 }
 0x11f   :  { %v192_v33 = vadd.f32 %v214_v31, %v191_v32 }
 0x121   :  { %194 = vst [vmem:[#allocation3] sm:$0xff] %v192_v33 }
 0x122   :  { %205 = dma.vmem_to_hbm [thread:$0]  %s201_s26, 128, %s203_s29, [#allocation4]  }
 0x123   :  { %239 = dma.done.wait [#allocation4], 128  }
 0x124   :  { %240 = vsyncadd [#allocation4], 4294967168 }
 0x125   :  { %210 = vsyncpa [#allocation4], 1 }

// kernel: tpu_custom_call.1
= control target key start
LH: loop header
LB: loop body
LE: loop exit
PB: predicated region body
PF: predicated region fallthrough
CT: control target
= control target key end

     0   :  { %vm35_vm0 = vcmask 1041408   ;;  %vm100_vm1 = vcmask 1041409   ;;  %s375_s0 = inlined_call_operand.vmem [shape: f32[8,2,128], index: 0, kind: input, shape index: {}]   ;;  %s376_s1 = inlined_call_operand.vmem [shape: f32[128,32], index: 1, kind: input, shape index: {}]   ;;  %s377_s2 = inlined_call_operand.vmem [shape: f32[1,32], index: 2, kind: input, shape index: {}]   ;;  %s378_s3 = inlined_call_operand.vmem [shape: f32[32,128], index: 3, kind: input, shape index: {}]   ;;  %s379_s4 = inlined_call_operand.vmem [shape: f32[1,128], index: 4, kind: input, shape index: {}]   ;;  %s380_s5 = inlined_call_operand.hbm [shape: f32[8,128], index: 5, kind: output, shape index: {}]  }
   0x1   :  { %v137_v0 = vld [vmem:[%s376_s1 + $0x78] sm:$0xff]  ;;  %v136_v1 = vld [vmem:[%s376_s1 + $0x70] sm:$0xff]  ;;  %v135_v2 = vld [vmem:[%s376_s1 + $0x68] sm:$0xff] }
   0x2   :  { %142 = vmatpush.msra.mxu0 %v137_v0  ;;  %v134_v3 = vld [vmem:[%s376_s1 + $0x60] sm:$0xff]  ;;  %v133_v4 = vld [vmem:[%s376_s1 + $0x58] sm:$0xff]  ;;  %v132_v7 = vld [vmem:[%s376_s1 + $0x50] sm:$0xff] }
   0x3   :  { %v27_v5 = vld [vmem:[%s375_s0] sm:$0x3]  ;;  %v28_v6 = vld [vmem:[%s375_s0 + $0x2] sm:$0x3]  ;;  %v29_v8 = vld [vmem:[%s375_s0 + $0x4] sm:$0x3] }
   0x4   :  { %143 = vmatpush.msra.mxu0 %v136_v1  ;;  %v30_v9 = vld [vmem:[%s375_s0 + $0x6] sm:$0x3]  ;;  %v31_v10 = vld [vmem:[%s375_s0 + $0x8] sm:$0x3]  ;;  %v32_v11 = vld [vmem:[%s375_s0 + $0xa] sm:$0x3] }
   0x5   :  { %v33_v12 = vld [vmem:[%s375_s0 + $0xc] sm:$0x3]  ;;  %v34_v13 = vld [vmem:[%s375_s0 + $0xe] sm:$0x3]  ;;  %v36_v14 = vsel %vm35_vm0, %v27_v5, 0.0  ;;  %v43_v15 = vsel %vm35_vm0, %v28_v6, 0.0 }
   0x6   :  { %144 = vmatpush.msra.mxu0 %v135_v2  ;;  %v50_v16 = vsel %vm35_vm0, %v29_v8, 0.0  ;;  %v57_v17 = vsel %vm35_vm0, %v30_v9, 0.0  ;;  %v165_v18 = vld [vmem:[%s378_s3 + $0x18] sm:$0xff]  ;;  %v164_v19 = vld [vmem:[%s378_s3 + $0x10] sm:$0xff]  ;;  %v37_v20 = vrot.slane %v36_v14, 4  ;;  %v44_v21 = vrot.slane %v43_v15, 4 }
   0x7   :  { %v51_v22 = vrot.slane %v50_v16, 4  ;;  %v58_v23 = vrot.slane %v57_v17, 4  ;;  %186 = vmatpush.msra.mxu1 %v165_v18  ;;  %v131_v24 = vld [vmem:[%s376_s1 + $0x48] sm:$0xff]  ;;  %v64_v25 = vsel %vm35_vm0, %v31_v10, 0.0  ;;  %v71_v26 = vsel %vm35_vm0, %v32_v11, 0.0 }
   0x8   :  { %145 = vmatpush.msra.mxu0 %v134_v3  ;;  %v78_v27 = vsel %vm35_vm0, %v33_v12, 0.0  ;;  %v85_v28 = vsel %vm35_vm0, %v34_v13, 0.0  ;;  %v38_v29 = vadd.f32 %v37_v20, %v36_v14  ;;  %v45_v30 = vadd.f32 %v44_v21, %v43_v15 }
   0x9   :  { %v52_v31 = vadd.f32 %v51_v22, %v50_v16  ;;  %v59_v32 = vadd.f32 %v58_v23, %v57_v17 }
   0xa   :  { %146 = vmatpush.msra.mxu0 %v133_v4 }
   0xc   :  { %147 = vmatpush.msra.mxu0 %v132_v7 }
   0xd   :  { %10 = vsyncpa [#allocation4], 0  ;;  %v130_v33 = vld [vmem:[%s376_s1 + $0x40] sm:$0xff]  ;;  %v65_v34 = vrot.slane %v64_v25, 4  ;;  %v72_v35 = vrot.slane %v71_v26, 4  ;;  %v79_v36 = vrot.slane %v78_v27, 4  ;;  %187 = vmatpush.msra.mxu1 %v164_v19 }
   0xe   :  { %v86_v37 = vrot.slane %v85_v28, 4  ;;  %vm102_vm2 = vcmask 1042434   ;;  %148 = vmatpush.msra.mxu0 %v131_v24  ;;  %v39_v38 = vrot.slane %v38_v29, 2  ;;  %v46_v39 = vrot.slane %v45_v30, 2  ;;  %v129_v42 = vld [vmem:[%s376_s1 + $0x38] sm:$0xff]  ;;  %v128_v51 = vld [vmem:[%s376_s1 + $0x30] sm:$0xff] }
   0xf   :  { %v53_v40 = vrot.slane %v52_v31, 2  ;;  %v60_v41 = vrot.slane %v59_v32, 2  ;;  %v66_v43 = vadd.f32 %v65_v34, %v64_v25  ;;  %v73_v44 = vadd.f32 %v72_v35, %v71_v26  ;;  %v127_v60 = vld [vmem:[%s376_s1 + $0x28] sm:$0xff]  ;;  %v126_v5 = vld [vmem:[%s376_s1 + $0x20] sm:$0xff]  ;;  %v125_v11 = vld [vmem:[%s376_s1 + $0x18] sm:$0xff]  ;;  %s241_s25 = smov [#allocation3]  }
  0x10   :  { %v80_v45 = vadd.f32 %v79_v36, %v78_v27  ;;  %v87_v46 = vadd.f32 %v86_v37, %v85_v28  ;;  %149 = vmatpush.msra.mxu0 %v130_v33  ;;  %v40_v47 = vadd.f32 %v39_v38, %v38_v29  ;;  %v47_v48 = vadd.f32 %v46_v39, %v45_v30  ;;  %v124_v16 = vld [vmem:[%s376_s1 + $0x10] sm:$0xff]  ;;  %v123_v20 = vld [vmem:[%s376_s1 + $0x8] sm:$0xff]  ;;  %v122_v23 = vld [vmem:[%s376_s1] sm:$0xff]  ;;  %s200_s26 = sshll.u32 %s241_s25, 4  ;;  %s202_s29 = sshll.u32 %s380_s5, 4  ;;  %s201_s26 = int_to_ptr.vmem [resolvable:$true] %s200_s26  ;;  %s203_s29 = int_to_ptr.hbm [resolvable:$true] %s202_s29 }
  0x11   :  { %v54_v49 = vadd.f32 %v53_v40, %v52_v31  ;;  %v61_v50 = vadd.f32 %v60_v41, %v59_v32  ;;  %v67_v52 = vrot.slane %v66_v43, 2  ;;  %v74_v53 = vrot.slane %v73_v44, 2  ;;  %v163_v26 = vld [vmem:[%s378_s3 + $0x8] sm:$0xff]  ;;  %v162_v27 = vld [vmem:[%s378_s3] sm:$0xff] }
  0x12   :  { %v81_v54 = vrot.slane %v80_v45, 2  ;;  %v88_v55 = vrot.slane %v87_v46, 2  ;;  %150 = vmatpush.msra.mxu0 %v129_v42  ;;  %v41_v56 = vrot.slane %v40_v47, 1  ;;  %v48_v57 = vrot.slane %v47_v48, 1  ;;  %188 = vmatpush.msra.mxu1 %v163_v26  ;;  %v213_v28 = vld [vmem:[%s377_s2] ss:$0 sm:$0xff] }
  0x13   :  { %v55_v58 = vrot.slane %v54_v49, 1  ;;  %v62_v59 = vrot.slane %v61_v50, 1  ;;  %v68_v61 = vadd.f32 %v67_v52, %v66_v43  ;;  %v75_v62 = vadd.f32 %v74_v53, %v73_v44  ;;  %v214_v31 = vld [vmem:[%s379_s4] ss:$0 sm:$0xff] }
  0x14   :  { %v82_v63 = vadd.f32 %v81_v54, %v80_v45  ;;  %v89_v0 = vadd.f32 %v88_v55, %v87_v46  ;;  %151 = vmatpush.msra.mxu0 %v128_v51  ;;  %v42_v1 = vadd.f32 %v41_v56, %v40_v47  ;;  %v49_v2 = vadd.f32 %v48_v57, %v47_v48 }
  0x15   :  { %v56_v3 = vadd.f32 %v55_v58, %v54_v49  ;;  %v63_v4 = vadd.f32 %v62_v59, %v61_v50  ;;  %v69_v6 = vrot.slane %v68_v61, 1  ;;  %v76_v7 = vrot.slane %v75_v62, 1  ;;  %189 = vmatpush.msra.mxu1 %v162_v27 }
  0x16   :  { %v83_v8 = vrot.slane %v82_v63, 1  ;;  %v90_v9 = vrot.slane %v89_v0, 1  ;;  %152 = vmatpush.msra.mxu0 %v127_v60  ;;  %v101_v10 = vsel %vm100_vm1, %v49_v2, %v42_v1  ;;  %vm104_vm3 = vcmask 1043459  }
  0x17   :  { %v70_v12 = vadd.f32 %v69_v6, %v68_v61  ;;  %v77_v13 = vadd.f32 %v76_v7, %v75_v62  ;;  %vm106_vm4 = vcmask 1044484   ;;  %v103_v15 = vsel %vm102_vm2, %v56_v3, %v101_v10 }
  0x18   :  { %153 = vmatpush.msra.mxu0 %v126_v5  ;;  %v84_v14 = vadd.f32 %v83_v8, %v82_v63  ;;  %vm108_vm5 = vcmask 1045509   ;;  %v91_v17 = vadd.f32 %v90_v9, %v89_v0  ;;  %v105_v18 = vsel %vm104_vm3, %v63_v4, %v103_v15 }
  0x19   :  { %vm110_vm6 = vcmask 1046534   ;;  %v107_v19 = vsel %vm106_vm4, %v70_v12, %v105_v18  ;;  %vm112_vm7 = vcmask 1047559   ;;  %vm170_vm8 = vcmask 261120  }
  0x1a   :  { %154 = vmatpush.msra.mxu0 %v125_v11  ;;  %v109_v21 = vsel %vm108_vm5, %v77_v13, %v107_v19 }
  0x1b   :  { %v111_v22 = vsel %vm110_vm6, %v84_v14, %v109_v21 }
  0x1c   :  { %155 = vmatpush.msra.mxu0 %v124_v16  ;;  %v113_v24 = vsel %vm112_vm7, %v91_v17, %v111_v22 }
  0x1d   :  { %v121_v25 = vmul.f32 0.125, %v113_v24 }
  0x1e   :  { %156 = vmatpush.msra.mxu0 %v123_v20 }
  0x20   :  { %157 = vmatpush.msra.mxu0 %v122_v23 }
  0x21   :  { %158 = vmatmul.f32.vlgmr.msra.gmra.mxu0 %v121_v25 }
  0x9e   :  { %v159_v29 = vpop.f32.mrf.mxu0 }
  0x9f   :  { %v160_v30 = vadd.f32 %v213_v28, %v159_v29 }
  0xa1   :  { %211 = vmatmul.msk.f32.vlgmr.msra.gmra.mxu1 %vm170_vm8, %v160_v30 }
 0x11e   :  { %v191_v32 = vpop.f32.mrf.mxu1 }
 0x11f   :  { %v192_v33 = vadd.f32 %v214_v31, %v191_v32 }
 0x121   :  { %194 = vst [vmem:[#allocation3] sm:$0xff] %v192_v33 }
 0x122   :  { %205 = dma.vmem_to_hbm [thread:$0]  %s201_s26, 128, %s203_s29, [#allocation4]  }
 0x123   :  { %239 = dma.done.wait [#allocation4], 128  }
 0x124   :  { %240 = vsyncadd [#allocation4], 4294967168 }
 0x125   :  { %210 = vsyncpa [#allocation4], 1 }

</bundles_post_ra>
